<compile_context>
chip_gen: v6e
topology: v6e:2x2x1
jax: 0.10.0
libtpu: 0.0.40
codegen_flags: <defaults>
</compile_context>

<pallas_src>
import functools

import jax
import jax.numpy as jnp
from jax.experimental import pallas as pl
from jax.experimental.pallas import tpu as pltpu


def _timestep_embedding_kernel(x_ref, w1_ref, b1_ref, w2_ref, b2_ref, o_ref):
    """out_tile = SiLU(x @ W1 + b1) @ W2[:, n_tile] + b2[n_tile].

    W1 is (C, D) bf16 and the W2 tile is (D, tn) bf16, both already in [K, N]
    layout, so both dots are canonical MXU matmuls with no transpose.
    """
    x = x_ref[...].astype(jnp.bfloat16)                                    # (tb, C)

    # linear_1 (bf16 x bf16 -> f32 accumulate) + bias
    h = jnp.dot(x, w1_ref[...],
                preferred_element_type=jnp.float32) + b1_ref[...]          # (tb, D) f32

    # SiLU with a single EUP transcendental: x*sigmoid(x) = 0.5*x*(1 + tanh(x/2)).
    h = 0.5 * h * (1.0 + jnp.tanh(0.5 * h))

    # linear_2 (bf16 x bf16 -> f32 accumulate) + bias
    out = jnp.dot(h.astype(jnp.bfloat16), w2_ref[...],
                  preferred_element_type=jnp.float32) + b2_ref[...]        # (tb, tn) f32
    o_ref[...] = out.astype(o_ref.dtype)


def prepare_params(w1, b1, w2, b2):
    """One-time (init-time) parameter prep.

    Transposes the PyTorch [out, in] weights to [in, out] so the kernel dots are
    canonical [M,K]x[K,N] (no in-kernel transpose), casts weights to bf16 (native
    MXU dtype, halves HBM/VMEM footprint) and views biases as (1, D) f32.
    """
    return (jnp.asarray(w1, jnp.bfloat16).T,              # (C, D)
            jnp.asarray(b1, jnp.float32).reshape(1, -1),  # (1, D)
            jnp.asarray(w2, jnp.bfloat16).T,              # (D, D), [in, out]
            jnp.asarray(b2, jnp.float32).reshape(1, -1))  # (1, D)


def _round_up(x, m):
    return ((x + m - 1) // m) * m


def _buf_bytes(rows, cols, itemsize):
    # VMEM footprint of one buffer, padded to the (8, 128) layout tile.
    return _round_up(rows, 8) * _round_up(cols, 128) * itemsize


def _vmem_estimate(tb, tn, C, D, grid_n, out_itemsize):
    param_bufs = 1 if grid_n == 1 else 2   # W2/b2 single-buffered only when invariant
    return (
        _buf_bytes(C, D, 2)                        # W1 bf16 (Buffered(1))
        + _buf_bytes(1, D, 4)                      # b1 f32  (Buffered(1))
        + _buf_bytes(D, tn, 2) * param_bufs        # W2 tile bf16
        + _buf_bytes(1, tn, 4) * param_bufs        # b2 tile f32
        + _buf_bytes(tb, C, 4) * 2                 # x tile f32 (double-buffered)
        + _buf_bytes(tb, tn, out_itemsize) * 2     # out tile (double-buffered)
        + _buf_bytes(tb, D, 4)                     # h intermediate (f32)
        + _buf_bytes(tb, D, 2)                     # h bf16 cast
        + _buf_bytes(tb, C, 2)                     # x bf16 cast
    )


@functools.partial(jax.jit, static_argnames=("block_b", "out_dtype"))
def timestep_embedding(sample, w1_t, b1_2d, w2_t, b2_2d, *, block_b=256, out_dtype=None):
    """sample: [B, C]; prepared params from prepare_params()  ->  [B, D]."""
    B, C = sample.shape
    D = w1_t.shape[1]
    out_dtype = sample.dtype if out_dtype is None else out_dtype
    out_itemsize = jnp.dtype(out_dtype).itemsize

    # N-tile for linear_2: only split when D is large.  Keeps the resident W2
    # tile bounded for v7x's 64 MiB VMEM and gives the second TensorCore work
    # when the batch grid collapses to a single tile.
    if D > 2048 and D % 2048 == 0:
        tn = 2048
    else:
        tn = D
    grid_n = D // tn

    # Batch tile: fill the 256-wide MXU when possible; multiple of 16 sublanes
    # (bf16 packs 16 sublanes per vreg), minimum multiple of 8.
    if B >= block_b:
        tb = block_b
    elif B >= 16:
        tb = _round_up(B, 16)
    else:
        tb = _round_up(max(B, 1), 8)

    # Shrink the batch tile if the working set would blow the VMEM budget.
    VMEM_BUDGET = 40 << 20
    while tb > 16 and _vmem_estimate(tb, tn, C, D, grid_n, out_itemsize) > VMEM_BUDGET:
        tb = _round_up(max(16, tb // 2), 16)

    grid_b = pl.cdiv(B, tb)
    b_pad = grid_b * tb
    x = sample if b_pad == B else jnp.pad(sample, ((0, b_pad - B), (0, 0)))

    est = _vmem_estimate(tb, tn, C, D, grid_n, out_itemsize)
    vmem_limit = min(max(int(est * 1.4) + (4 << 20), 32 << 20), 96 << 20)

    resident = pl.Buffered(1)  # grid-invariant blocks: one VMEM copy, no double buffer
    if grid_n == 1:
        w2_spec = pl.BlockSpec((D, tn), lambda n, b: (0, n), pipeline_mode=resident)
        b2_spec = pl.BlockSpec((1, tn), lambda n, b: (0, n), pipeline_mode=resident)
    else:
        # W2/b2 blocks change with the (outer) N axis -> keep default pipelining
        # so the next N-tile's DMA overlaps with MXU work.
        w2_spec = pl.BlockSpec((D, tn), lambda n, b: (0, n))
        b2_spec = pl.BlockSpec((1, tn), lambda n, b: (0, n))

    out = pl.pallas_call(
        _timestep_embedding_kernel,
        out_shape=jax.ShapeDtypeStruct((b_pad, D), out_dtype),
        grid=(grid_n, grid_b),  # N-tiles outer, batch tiles inner
        in_specs=[
            pl.BlockSpec((tb, C), lambda n, b: (b, 0)),                         # x tile
            pl.BlockSpec((C, D), lambda n, b: (0, 0), pipeline_mode=resident),  # W1
            pl.BlockSpec((1, D), lambda n, b: (0, 0), pipeline_mode=resident),  # b1
            w2_spec,                                                            # W2 tile
            b2_spec,                                                            # b2 tile
        ],
        out_specs=pl.BlockSpec((tb, tn), lambda n, b: (b, n)),
        compiler_params=pltpu.CompilerParams(
            # Every (n, b) tile is independent -> both axes parallel (megacore
            # sharding on v7x; harmless no-op on single-TC v5e/v6e).
            dimension_semantics=("parallel", "parallel"),
            vmem_limit_bytes=vmem_limit,
        ),
    )(x, w1_t, b1_2d, w2_t, b2_2d)

    if b_pad != B:
        out = out[:B]
    return out


if __name__ == "__main__":
    # Small shapes consistent with the module's forward: sample [B, channel].
    B = 8
    channel = 32
    time_embed_dim = 128

    key = jax.random.PRNGKey(0)
    k_x, k_w1, k_b1, k_w2, k_b2 = jax.random.split(key, 5)

    # PyTorch nn.Linear layout: weight [out, in], bias [out].
    sample = jax.random.normal(k_x, (B, channel), jnp.float32)
    w1 = jax.random.normal(k_w1, (time_embed_dim, channel), jnp.float32) / channel ** 0.5
    b1 = jax.random.normal(k_b1, (time_embed_dim,), jnp.float32) * 0.01
    w2 = jax.random.normal(k_w2, (time_embed_dim, time_embed_dim), jnp.float32) / time_embed_dim ** 0.5
    b2 = jax.random.normal(k_b2, (time_embed_dim,), jnp.float32) * 0.01

    # One-time init-style param prep (transpose + bf16 cast); the per-step call
    # has no extra XLA ops around the pallas_call.
    params = prepare_params(w1, b1, w2, b2)

    out = jax.block_until_ready(timestep_embedding(sample, *params))

    # Reference 1: the numerics the kernel uses (bf16 matmul inputs, f32 acc).
    def ref_bf16(x):
        h = jnp.dot(x.astype(jnp.bfloat16), w1.astype(jnp.bfloat16).T,
                    preferred_element_type=jnp.float32) + b1
        h = h * jax.nn.sigmoid(h)
        return jnp.dot(h.astype(jnp.bfloat16), w2.astype(jnp.bfloat16).T,
                       preferred_element_type=jnp.float32) + b2

    # Reference 2: full-f32 PyTorch-equivalent forward (sanity bound).
    # NOTE: weights are intentionally bf16 in the kernel (perf/precision tradeoff),
    # so agreement with the f32 reference is within bf16 tolerance, not exact.
    def ref_f32(x):
        h = x @ w1.T + b1
        h = h * jax.nn.sigmoid(h)
        return h @ w2.T + b2

    assert out.shape == (B, time_embed_dim)
    assert out.dtype == sample.dtype
    assert jnp.allclose(out, ref_bf16(sample), atol=2e-2, rtol=2e-2), \
        "mismatch vs bf16-matched reference"
    assert jnp.allclose(out, ref_f32(sample), atol=6e-2, rtol=6e-2), \
        "mismatch vs f32 reference beyond bf16 tolerance"

    print("KERNEL_OK")
</pallas_src>

<mosaic_0001>
module attributes {stable_mosaic.version = 11 : i64} {
  func.func @_timestep_embedding_kernel(%arg0: i32, %arg1: i32, %arg2: memref<8x32xf32, #tpu.memory_space<vmem>>, %arg3: memref<32x128xbf16, #tpu.memory_space<vmem>>, %arg4: memref<1x128xf32, #tpu.memory_space<vmem>>, %arg5: memref<128x128xbf16, #tpu.memory_space<vmem>>, %arg6: memref<1x128xf32, #tpu.memory_space<vmem>>, %arg7: memref<8x128xf32, #tpu.memory_space<vmem>>) attributes {dimension_semantics = [#tpu.dimension_semantics<parallel>, #tpu.dimension_semantics<parallel>], iteration_bounds = array<i64: 1, 1>, scalar_prefetch = 0 : i64, scratch_operands = 0 : i64, tpu.core_type = #tpu.core_type<tc>, window_params = [{transform_indices = @transform_0, window_bounds = array<i64: 8, 32>}, {pipeline_mode = #tpu.pipeline_mode<synchronous>, transform_indices = @transform_1, window_bounds = array<i64: 32, 128>}, {pipeline_mode = #tpu.pipeline_mode<synchronous>, transform_indices = @transform_2, window_bounds = array<i64: 1, 128>}, {pipeline_mode = #tpu.pipeline_mode<synchronous>, transform_indices = @transform_3, window_bounds = array<i64: 128, 128>}, {pipeline_mode = #tpu.pipeline_mode<synchronous>, transform_indices = @transform_4, window_bounds = array<i64: 1, 128>}, {transform_indices = @transform_5, window_bounds = array<i64: 8, 128>}]} {
    %c0 = arith.constant 0 : index
    %c0_0 = arith.constant 0 : index
    %0 = vector.load %arg2[%c0, %c0_0] : memref<8x32xf32, #tpu.memory_space<vmem>>, vector<8x32xf32>
    %1 = arith.truncf %0 : vector<8x32xf32> to vector<8x32xbf16>
    %c0_1 = arith.constant 0 : index
    %c0_2 = arith.constant 0 : index
    %2 = vector.load %arg3[%c0_1, %c0_2] : memref<32x128xbf16, #tpu.memory_space<vmem>>, vector<32x128xbf16>
    %cst = arith.constant dense<0.000000e+00> : vector<8x128xf32>
    %3 = tpu.matmul %1, %2, %cst {dimension_numbers = #tpu.dot_dimension_numbers<[1], [0], [0], [1], [0, 0, 1, 1], [], []>} : vector<8x32xbf16>, vector<32x128xbf16>, vector<8x128xf32> -> vector<8x128xf32>
    %c0_3 = arith.constant 0 : index
    %c0_4 = arith.constant 0 : index
    %4 = vector.load %arg4[%c0_3, %c0_4] : memref<1x128xf32, #tpu.memory_space<vmem>>, vector<1x128xf32>
    %5 = vector.broadcast %4 : vector<1x128xf32> to vector<8x128xf32>
    %6 = arith.addf %3, %5 : vector<8x128xf32>
    %cst_5 = arith.constant 5.000000e-01 : f32
    %7 = vector.broadcast %cst_5 : f32 to vector<8x128xf32>
    %8 = arith.mulf %7, %6 : vector<8x128xf32>
    %cst_6 = arith.constant 5.000000e-01 : f32
    %9 = vector.broadcast %cst_6 : f32 to vector<8x128xf32>
    %10 = arith.mulf %9, %6 : vector<8x128xf32>
    %11 = math.tanh %10 : vector<8x128xf32>
    %cst_7 = arith.constant 1.000000e+00 : f32
    %12 = vector.broadcast %cst_7 : f32 to vector<8x128xf32>
    %13 = arith.addf %12, %11 : vector<8x128xf32>
    %14 = arith.mulf %8, %13 : vector<8x128xf32>
    %15 = arith.truncf %14 : vector<8x128xf32> to vector<8x128xbf16>
    %c0_8 = arith.constant 0 : index
    %c0_9 = arith.constant 0 : index
    %16 = vector.load %arg5[%c0_8, %c0_9] : memref<128x128xbf16, #tpu.memory_space<vmem>>, vector<128x128xbf16>
    %cst_10 = arith.constant dense<0.000000e+00> : vector<8x128xf32>
    %17 = tpu.matmul %15, %16, %cst_10 {dimension_numbers = #tpu.dot_dimension_numbers<[1], [0], [0], [1], [0, 0, 1, 1], [], []>} : vector<8x128xbf16>, vector<128x128xbf16>, vector<8x128xf32> -> vector<8x128xf32>
    %c0_11 = arith.constant 0 : index
    %c0_12 = arith.constant 0 : index
    %18 = vector.load %arg6[%c0_11, %c0_12] : memref<1x128xf32, #tpu.memory_space<vmem>>, vector<1x128xf32>
    %19 = vector.broadcast %18 : vector<1x128xf32> to vector<8x128xf32>
    %20 = arith.addf %17, %19 : vector<8x128xf32>
    %c0_13 = arith.constant 0 : index
    %c0_14 = arith.constant 0 : index
    %21 = vector.load %arg7[%c0_13, %c0_14] : memref<8x128xf32, #tpu.memory_space<vmem>>, vector<8x128xf32>
    tpu.vector_store %arg7[%c0_13, %c0_14], %20 {strides = array<i32>} : memref<8x128xf32, #tpu.memory_space<vmem>>, vector<8x128xf32>,
    return
  }
  func.func @transform_0(%arg0: i32, %arg1: i32) -> (i32, i32) {
    %c0_i32 = arith.constant 0 : i32
    %c0_i32_0 = arith.constant 0 : i32
    return %arg1, %c0_i32 : i32, i32
  }
  func.func @transform_1(%arg0: i32, %arg1: i32) -> (i32, i32) {
    %c0_i32 = arith.constant 0 : i32
    %c0_i32_0 = arith.constant 0 : i32
    %c0_i32_1 = arith.constant 0 : i32
    return %c0_i32, %c0_i32_0 : i32, i32
  }
  func.func @transform_2(%arg0: i32, %arg1: i32) -> (i32, i32) {
    %c0_i32 = arith.constant 0 : i32
    %c0_i32_0 = arith.constant 0 : i32
    %c0_i32_1 = arith.constant 0 : i32
    return %c0_i32, %c0_i32_0 : i32, i32
  }
  func.func @transform_3(%arg0: i32, %arg1: i32) -> (i32, i32) {
    %c0_i32 = arith.constant 0 : i32
    %c0_i32_0 = arith.constant 0 : i32
    return %c0_i32, %arg0 : i32, i32
  }
  func.func @transform_4(%arg0: i32, %arg1: i32) -> (i32, i32) {
    %c0_i32 = arith.constant 0 : i32
    %c0_i32_0 = arith.constant 0 : i32
    return %c0_i32, %arg0 : i32, i32
  }
  func.func @transform_5(%arg0: i32, %arg1: i32) -> (i32, i32) {
    %c0_i32 = arith.constant 0 : i32
    return %arg1, %arg0 : i32, i32
  }
}

</mosaic_0001>

<bundles_post_ra>
// kernel: timestep_embedding.1
= control target key start
LH: loop header
LB: loop body
LE: loop exit
PB: predicated region body
PF: predicated region fallthrough
CT: control target
= control target key end

     0   :  { %10 = vsyncpa [#allocation3], 0  ;;  %s478_s0 = inlined_call_operand.hbm [shape: f32[8,32], index: 0, kind: input, shape index: {}]   ;;  %s479_s1 = inlined_call_operand.hbm [shape: bf16[32,128], index: 1, kind: input, shape index: {}]   ;;  %s480_s2 = inlined_call_operand.vmem [shape: f32[1,128], index: 2, kind: input, shape index: {}]   ;;  %s481_s3 = inlined_call_operand.hbm [shape: bf16[128,128], index: 3, kind: input, shape index: {}]   ;;  %s482_s4 = inlined_call_operand.vmem [shape: f32[1,128], index: 4, kind: input, shape index: {}]   ;;  %s483_s5 = inlined_call_operand.hbm [shape: f32[8,128], index: 5, kind: output, shape index: {}]  }
   0x1   :  { %11 = vsyncpa [#allocation6], 0 }
   0x2   :  { %12 = vsyncpa [#allocation4], 0  ;;  %s422_s18 = smov [#allocation5]  }
   0x3   :  { %s28_s19 = sshll.u32 %s422_s18, 4  ;;  %s29_s19 = int_to_ptr.vmem [resolvable:$true] %s28_s19 }
   0x4   :  { %s344_s20 = scalar_lea.vmem %s29_s19, 256  ;;  %p349_p1 = scmp.lt.s32.totalorder %s29_s19, %s29_s19 }
   0x5   :  { %p345_p0 = scmp.ne.s32.totalorder %s29_s19, %s344_s20  ;;  %p350_p2 = scmp.lt.s32.totalorder %s344_s20, %s344_s20 }
   0x7   :  { %p351_p3 = por %p350_p2, %p349_p1 }
   0x9   :  { %p352_p4 = pnand %p351_p3, %p345_p0 }
   0xb   :  { %355 = shalt.err (!%p352_p4)
}
   0xc   :  { %s423_s21 = smov 64   ;;  %s424_s22 = smov 4  }
   0xd   :  { %34 = dma.hbm_to_vmem [thread:$0]  %s479_s1, 256, %s29_s19, [#allocation6], %s423_s21, %s423_s21, %s424_s22  }
   0xe   :  { %s425_s25 = smov [#allocation2]   ;;  %s426_s27 = smov [#allocation7]  }
   0xf   :  { %s19_s26 = sshll.u32 %s425_s25, 4  ;;  %s42_s28 = sshll.u32 %s426_s27, 4  ;;  %s20_s26 = int_to_ptr.vmem [resolvable:$true] %s19_s26  ;;  %s43_s28 = int_to_ptr.vmem [resolvable:$true] %s42_s28 }
  0x10   :  { %s364_s29 = scalar_lea.vmem %s20_s26, 128  ;;  %p369_p6 = scmp.lt.s32.totalorder %s20_s26, %s20_s26 }
  0x11   :  { %p365_p5 = scmp.ne.s32.totalorder %s20_s26, %s364_s29  ;;  %p370_p7 = scmp.lt.s32.totalorder %s364_s29, %s364_s29 }
  0x13   :  { %p371_p8 = por %p370_p7, %p369_p6 }
  0x15   :  { %p372_p9 = pnand %p371_p8, %p365_p5 }
  0x17   :  { %375 = shalt.err (!%p372_p9)
}
  0x18   :  { %22 = dma.hbm_to_vmem [thread:$0]  %s478_s0, 128, %s20_s26, [#allocation3]  }
  0x19   :  { %s384_s7 = scalar_lea.vmem %s43_s28, 1024  ;;  %p389_p11 = scmp.lt.s32.totalorder %s43_s28, %s43_s28 }
  0x1a   :  { %p385_p10 = scmp.ne.s32.totalorder %s43_s28, %s384_s7  ;;  %p390_p12 = scmp.lt.s32.totalorder %s384_s7, %s384_s7 }
  0x1c   :  { %p391_p13 = por %p390_p12, %p389_p11 }
  0x1e   :  { %p392_p0 = pnand %p391_p13, %p385_p10 }
  0x20   :  { %395 = shalt.err (!%p392_p0)
}
  0x21   :  { %48 = dma.hbm_to_vmem [thread:$0]  %s481_s3, 1024, %s43_s28, [#allocation6], %s423_s21, %s423_s21, %s424_s22  }
  0x22   :  { %416 = dma.done.wait [#allocation3], 128  }
  0x23   :  { %417 = vsyncadd [#allocation3], 4294967168 }
  0x24   :  { %418 = dma.done.wait [#allocation6], 1280  }
  0x25   :  { %419 = vsyncadd [#allocation6], 4294966016  ;;  %v427_v0 = vmov 0.0   ;;  %vm428_vm0 = vmmov 0   ;;  %v324_v1 = vld [vmem:[#allocation5 + $0x8] sm:$0xff]   ;;  %v325_v2 = vld [vmem:[#allocation5] sm:$0xff]  }
  0x26   :  { %288 = vmatprep.subr.bf16.mxu0 %v427_v0  ;;  %292 = vmatprep.mubr.msk.bf16.mxu0 %vm428_vm0, %v427_v0  ;;  %v61_v3 = vld [vmem:[#allocation2] sm:$0xff]  ;;  %v326_v4 = vld [vmem:[#allocation7 + $0x38] sm:$0xff]   ;;  %vm86_vm1 = vcmask 261120   ;;  %v327_v5 = vld [vmem:[#allocation7 + $0x30] sm:$0xff]   ;;  %s429_s11 = smov [#allocation8]  }
  0x27   :  { %296 = vmatprep.subr.bf16.mxu1 %v427_v0  ;;  %312 = vmatprep.mubr.msk.bf16.mxu1 %vm428_vm0, %v427_v0  ;;  %v62_v6 = vpack.c.bf16 %v61_v3, %v61_v3  ;;  %v328_v7 = vld [vmem:[#allocation7 + $0x28] sm:$0xff]   ;;  %v329_v8 = vld [vmem:[#allocation7 + $0x20] sm:$0xff]   ;;  %v330_v9 = vld [vmem:[#allocation7 + $0x18] sm:$0xff]   ;;  %s253_s12 = sshll.u32 %s429_s11, 4  ;;  %s254_s12 = int_to_ptr.vmem [resolvable:$true] %s253_s12 }
  0x28   :  { %289 = vmatpush3.bf16.msra.mxu0 %v324_v1  ;;  %297 = vmatpush3.bf16.msra.mxu1 %v326_v4  ;;  %v331_v10 = vld [vmem:[#allocation7 + $0x10] sm:$0xff]   ;;  %v332_v11 = vld [vmem:[#allocation7 + $0x8] sm:$0xff]   ;;  %v333_v12 = vld [vmem:[#allocation7] sm:$0xff]   ;;  %p401_p2 = scmp.lt.s32.totalorder %s254_s12, %s254_s12 }
  0x29   :  { %290 = vmatprep.subr.bf16.mxu0 %v427_v0  ;;  %298 = vmatprep.subr.bf16.mxu1 %v427_v0  ;;  %v263_v13 = vld [vmem:[%s480_s2] ss:$0 sm:$0xff]  ;;  %s396_s2 = scalar_lea.vmem %s254_s12, 128 }
  0x2a   :  { %v267_v24 = vld [vmem:[%s482_s4] ss:$0 sm:$0xff]  ;;  %p397_p1 = scmp.ne.s32.totalorder %s254_s12, %s396_s2  ;;  %p402_p3 = scmp.lt.s32.totalorder %s396_s2, %s396_s2 }
  0x2c   :  { %291 = vmatpush3.bf16.msra.mxu0 %v325_v2  ;;  %299 = vmatpush3.bf16.msra.mxu1 %v327_v5  ;;  %p403_p4 = por %p402_p3, %p401_p2 }
  0x2d   :  { %300 = vmatprep.subr.bf16.mxu1 %v427_v0 }
  0x2e   :  { %p404_p5 = pnand %p403_p4, %p397_p1 }
  0x2f   :  { %293 = vmatmul.mubr.msk.bf16.vlgmr.msra.gmra.mxu0 %vm86_vm1, %v62_v6 }
  0x30   :  { %301 = vmatpush3.bf16.msra.mxu1 %v328_v7 }
  0x31   :  { %302 = vmatprep.subr.bf16.mxu1 %v427_v0 }
  0x34   :  { %303 = vmatpush3.bf16.msra.mxu1 %v329_v8 }
  0x35   :  { %304 = vmatprep.subr.bf16.mxu1 %v427_v0 }
  0x38   :  { %305 = vmatpush3.bf16.msra.mxu1 %v330_v9 }
  0x39   :  { %306 = vmatprep.subr.bf16.mxu1 %v427_v0 }
  0x3c   :  { %307 = vmatpush3.bf16.msra.mxu1 %v331_v10 }
  0x3d   :  { %308 = vmatprep.subr.bf16.mxu1 %v427_v0 }
  0x40   :  { %309 = vmatpush3.bf16.msra.mxu1 %v332_v11 }
  0x41   :  { %310 = vmatprep.subr.bf16.mxu1 %v427_v0 }
  0x44   :  { %311 = vmatpush3.bf16.msra.mxu1 %v333_v12 }
  0xef   :  { %v124_v14 = vpop.f32.mrf.mxu0 }
  0xf0   :  { %v125_v15 = vadd.f32 %v263_v13, %v124_v14 }
  0xf1   :  { %v294_v16 = vpop.f32.mrf.mxu0 }
  0xf2   :  { %v130_v17 = vmul.f32 0.5, %v125_v15 }
  0xf3   :  { %v127_v18 = vpop.f32.mrf.mxu0 }
  0xf4   :  { %334 = vtanh.f32 %v130_v17 }
  0xf5   :  { %v295_v19 = vpop.f32.mrf.mxu0 }
 0x101   :  { %v335_v20 = vpop.eup %334 }
 0x102   :  { %v132_v21 = vadd.f32 1.0, %v335_v20 }
 0x104   :  { %v133_v22 = vmul.f32 %v132_v21, %v130_v17 }
 0x106   :  { %v134_v23 = vpack.c.bf16 %v133_v22, %v133_v22 }
 0x108   :  { %313 = vmatmul.mubr.bf16.vlgmr.msra.gmra.mxu1 %v134_v23 }
 0x1c8   :  { %v240_v25 = vpop.f32.mrf.mxu1 }
 0x1c9   :  { %v241_v26 = vadd.f32 %v267_v24, %v240_v25 }
 0x1ca   :  { %v314_v27 = vpop.f32.mrf.mxu1 }
 0x1cb   :  { %246 = vst [vmem:[#allocation8] sm:$0xff] %v241_v26 }
 0x1cc   :  { %v243_v28 = vpop.f32.mrf.mxu1 }
 0x1cd   :  { %407 = shalt.err (!%p404_p5)
}
 0x1ce   :  { %256 = dma.vmem_to_hbm [thread:$0]  %s254_s12, 128, %s483_s5, [#allocation4]   ;;  %v315_v29 = vpop.f32.mrf.mxu1 }
 0x1cf   :  { %420 = dma.done.wait [#allocation4], 128  }
 0x1d0   :  { %421 = vsyncadd [#allocation4], 4294967168 }
 0x1d1   :  { %260 = vsyncpa [#allocation3], 1 }
 0x1d2   :  { %261 = vsyncpa [#allocation6], 1 }
 0x1d3   :  { %262 = vsyncpa [#allocation4], 1 }

</bundles_post_ra>
